<compile_context>
chip_gen: v6e
topology: v6e:2x2x1
jax: 0.10.0
libtpu: 0.0.40
codegen_flags: <defaults>
</compile_context>

<pallas_src>
import jax
import jax.numpy as jnp
from jax.experimental import pallas as pl
from jax.experimental.pallas import tpu as pltpu


def _round_up(v: int, m: int) -> int:
    return (v + m - 1) // m * m


def _choose_k_tiling(k: int, max_tk: int):
    """Pick (tk, k_pad) so every K block is fully in-bounds (zero-padded if needed)."""
    if k <= max_tk:
        return k, k  # single K block equal to the full dim -> no padding at all
    k_pad = _round_up(k, 128)
    tk = 128
    t = 256
    while t <= max_tk:
        if k_pad % t == 0:
            tk = t
        t += 128
    return tk, k_pad


def _linear_kernel(x_ref, w_ref, b_ref, o_ref):
    k = pl.program_id(2)
    partial = jnp.dot(x_ref[...], w_ref[...], preferred_element_type=jnp.float32)

    @pl.when(k == 0)
    def _init():
        # Bias folded into the init step: added exactly once per output tile,
        # no separate epilogue pass over the (tm, tn) block.
        o_ref[...] = b_ref[...] + partial

    @pl.when(k > 0)
    def _accumulate():
        # Output block index (i, j) is invariant over k, so this f32 block is
        # resident in VMEM for the whole reduction (no extra scratch needed).
        o_ref[...] += partial


def custom_linear1(x, weight, bias, *, tm=512, tn=512, max_tk=1024,
                   input_dtype=jnp.bfloat16):
    """y = x @ weight + bias, matching CustomLinear1.forward semantics."""
    in_channel, out_channel = weight.shape
    assert x.shape[-1] == in_channel

    lead_shape = x.shape[:-1]
    m = 1
    for d in lead_shape:
        m *= d
    n = out_channel

    x2d = x.reshape(m, in_channel).astype(input_dtype)
    w2d = weight.astype(input_dtype)
    b2d = bias.reshape(1, n).astype(jnp.float32)

    # Tile selection: block dims must be (8, 128)-multiples or equal the full dim.
    tm = tm if m > tm else m          # single M block == full dim when small
    tn = tn if n > tn else n          # single N block == full dim when small
    tk, k_pad = _choose_k_tiling(in_channel, max_tk)

    # Guarantee >=2 blocks on a parallel axis so v7x's two TensorCores both work.
    if pl.cdiv(m, tm) * pl.cdiv(n, tn) == 1:
        if n >= 256:
            tn = _round_up(pl.cdiv(n, 2), 128)
        elif m >= 16:
            tm = _round_up(pl.cdiv(m, 2), 8)

    # K is the only axis that needs zero padding (ragged K would accumulate garbage).
    if k_pad > in_channel:
        x2d = jnp.pad(x2d, ((0, 0), (0, k_pad - in_channel)))
        w2d = jnp.pad(w2d, ((0, k_pad - in_channel), (0, 0)))

    grid = (pl.cdiv(m, tm), pl.cdiv(n, tn), k_pad // tk)

    # Generation-aware scoped-VMEM budget: double-buffered bf16 inputs + bias,
    # plus the resident f32 output block; cap at half the physical VMEM.
    in_bytes = jnp.dtype(input_dtype).itemsize
    tile_bytes = (2 * (tm * tk + tk * tn) * in_bytes + 2 * tn * 4 + tm * tn * 4)
    try:
        vmem_cap = pltpu.get_tpu_info().vmem_capacity_bytes
    except Exception:
        vmem_cap = 64 << 20  # v7x per-TensorCore capacity (most conservative)
    vmem_limit = int(min(vmem_cap // 2, max(2 * tile_bytes, 16 << 20)))

    cost = pl.CostEstimate(
        flops=2 * m * n * k_pad,
        transcendentals=0,
        bytes_accessed=int(
            m * k_pad * in_bytes * grid[1]       # x streamed once per N tile
            + k_pad * n * in_bytes * grid[0]     # W streamed once per M tile
            + m * n * 4                          # output written once
            + n * 4                              # bias
        ),
    )

    out2d = pl.pallas_call(
        _linear_kernel,
        out_shape=jax.ShapeDtypeStruct((m, n), jnp.float32),
        grid=grid,
        in_specs=[
            pl.BlockSpec((tm, tk), lambda i, j, k: (i, k)),
            pl.BlockSpec((tk, tn), lambda i, j, k: (k, j)),
            pl.BlockSpec((1, tn), lambda i, j, k: (0, j)),
        ],
        out_specs=pl.BlockSpec((tm, tn), lambda i, j, k: (i, j)),
        compiler_params=pltpu.CompilerParams(
            dimension_semantics=("parallel", "parallel", "arbitrary"),
            vmem_limit_bytes=vmem_limit,
        ),
        cost_estimate=cost,
    )(x2d, w2d, b2d)

    return out2d.reshape(*lead_shape, n)


if __name__ == "__main__":
    in_channel = 32
    out_channel = 32
    batch, seq = 2, 8

    key = jax.random.PRNGKey(0)
    k_x, k_w, k_b = jax.random.split(key, 3)

    # Deterministic parameter init mirroring reset_parameters(): uniform(-1, 1).
    weight = jax.random.uniform(
        k_w, (in_channel, out_channel), dtype=jnp.float32, minval=-1.0, maxval=1.0
    )
    bias = jax.random.uniform(
        k_b, (out_channel,), dtype=jnp.float32, minval=-1.0, maxval=1.0
    )
    x = jax.random.normal(k_x, (batch, seq, in_channel), dtype=jnp.float32)

    y = custom_linear1(x, weight, bias)
    jax.block_until_ready(y)

    # Sanity check against the plain-JAX f32 reference; tolerance accounts for
    # the bf16 input cast (f32 accumulation) on the MXU fast path.
    y_ref = jnp.matmul(x, weight) + bias
    assert y.shape == (batch, seq, out_channel)
    assert jnp.allclose(y, y_ref, atol=5e-2, rtol=5e-2)

    print("KERNEL_OK")
</pallas_src>

<mosaic_0001>
module attributes {stable_mosaic.version = 11 : i64} {
  func.func @_linear_kernel(%arg0: i32, %arg1: i32, %arg2: i32, %arg3: memref<8x32xbf16, #tpu.memory_space<vmem>>, %arg4: memref<32x32xbf16, #tpu.memory_space<vmem>>, %arg5: memref<1x32xf32, #tpu.memory_space<vmem>>, %arg6: memref<8x32xf32, #tpu.memory_space<vmem>>) attributes {dimension_semantics = [#tpu.dimension_semantics<parallel>, #tpu.dimension_semantics<parallel>, #tpu.dimension_semantics<arbitrary>], iteration_bounds = array<i64: 2, 1, 1>, scalar_prefetch = 0 : i64, scratch_operands = 0 : i64, tpu.core_type = #tpu.core_type<tc>, window_params = [{transform_indices = @transform_0, window_bounds = array<i64: 8, 32>}, {transform_indices = @transform_1, window_bounds = array<i64: 32, 32>}, {transform_indices = @transform_2, window_bounds = array<i64: 1, 32>}, {transform_indices = @transform_3, window_bounds = array<i64: 8, 32>}]} {
    %c0 = arith.constant 0 : index
    %c0_0 = arith.constant 0 : index
    %0 = vector.load %arg3[%c0, %c0_0] : memref<8x32xbf16, #tpu.memory_space<vmem>>, vector<8x32xbf16>
    %c0_1 = arith.constant 0 : index
    %c0_2 = arith.constant 0 : index
    %1 = vector.load %arg4[%c0_1, %c0_2] : memref<32x32xbf16, #tpu.memory_space<vmem>>, vector<32x32xbf16>
    %cst = arith.constant dense<0.000000e+00> : vector<8x32xf32>
    %2 = tpu.matmul %0, %1, %cst {dimension_numbers = #tpu.dot_dimension_numbers<[1], [0], [0], [1], [0, 0, 1, 1], [], []>} : vector<8x32xbf16>, vector<32x32xbf16>, vector<8x32xf32> -> vector<8x32xf32>
    %c0_i32 = arith.constant 0 : i32
    %3 = arith.cmpi eq, %arg2, %c0_i32 : i32
    %4 = arith.extui %3 : i1 to i32
    %c0_i32_3 = arith.constant 0 : i32
    %5 = arith.cmpi ne, %4, %c0_i32_3 : i32
    scf.if %5 {
      %c0_6 = arith.constant 0 : index
      %c0_7 = arith.constant 0 : index
      %9 = vector.load %arg5[%c0_6, %c0_7] : memref<1x32xf32, #tpu.memory_space<vmem>>, vector<1x32xf32>
      %10 = vector.broadcast %9 : vector<1x32xf32> to vector<8x32xf32>
      %11 = arith.addf %10, %2 : vector<8x32xf32>
      %c0_8 = arith.constant 0 : index
      %c0_9 = arith.constant 0 : index
      %12 = vector.load %arg6[%c0_8, %c0_9] : memref<8x32xf32, #tpu.memory_space<vmem>>, vector<8x32xf32>
      tpu.vector_store %arg6[%c0_8, %c0_9], %11 {strides = array<i32>} : memref<8x32xf32, #tpu.memory_space<vmem>>, vector<8x32xf32>,
    } else {
    }
    %c0_i32_4 = arith.constant 0 : i32
    %6 = arith.cmpi sgt, %arg2, %c0_i32_4 : i32
    %7 = arith.extui %6 : i1 to i32
    %c0_i32_5 = arith.constant 0 : i32
    %8 = arith.cmpi ne, %7, %c0_i32_5 : i32
    scf.if %8 {
      %c0_6 = arith.constant 0 : index
      %c0_7 = arith.constant 0 : index
      %9 = vector.load %arg6[%c0_6, %c0_7] : memref<8x32xf32, #tpu.memory_space<vmem>>, vector<8x32xf32>
      %10 = arith.addf %9, %2 : vector<8x32xf32>
      %c0_8 = arith.constant 0 : index
      %c0_9 = arith.constant 0 : index
      %11 = vector.load %arg6[%c0_8, %c0_9] : memref<8x32xf32, #tpu.memory_space<vmem>>, vector<8x32xf32>
      tpu.vector_store %arg6[%c0_8, %c0_9], %10 {strides = array<i32>} : memref<8x32xf32, #tpu.memory_space<vmem>>, vector<8x32xf32>,
    } else {
    }
    return
  }
  func.func @transform_0(%arg0: i32, %arg1: i32, %arg2: i32) -> (i32, i32) {
    %c0_i32 = arith.constant 0 : i32
    return %arg0, %arg2 : i32, i32
  }
  func.func @transform_1(%arg0: i32, %arg1: i32, %arg2: i32) -> (i32, i32) {
    %c0_i32 = arith.constant 0 : i32
    return %arg2, %arg1 : i32, i32
  }
  func.func @transform_2(%arg0: i32, %arg1: i32, %arg2: i32) -> (i32, i32) {
    %c0_i32 = arith.constant 0 : i32
    %c0_i32_0 = arith.constant 0 : i32
    return %c0_i32, %arg1 : i32, i32
  }
  func.func @transform_3(%arg0: i32, %arg1: i32, %arg2: i32) -> (i32, i32) {
    %c0_i32 = arith.constant 0 : i32
    return %arg0, %arg1 : i32, i32
  }
}

</mosaic_0001>

<bundles_post_ra>
// kernel: tpu_custom_call.1
= control target key start
LH: loop header
LB: loop body
LE: loop exit
PB: predicated region body
PF: predicated region fallthrough
CT: control target
= control target key end

     0   :  { %8 = vsyncpa [#allocation3], 0  ;;  %s917_s0 = inlined_call_operand.hbm [shape: bf16[16,32], index: 0, kind: input, shape index: {}]   ;;  %s918_s1 = inlined_call_operand.hbm [shape: bf16[32,32], index: 1, kind: input, shape index: {}]   ;;  %s919_s2 = inlined_call_operand.vmem [shape: f32[1,32], index: 2, kind: input, shape index: {}]   ;;  %s920_s3 = inlined_call_operand.hbm [shape: f32[16,32], index: 3, kind: output, shape index: {}]  }
   0x1   :  { %10 = vsyncpa [#allocation3 + $0x1], 0 }
   0x2   :  { %11 = vsyncpa [#allocation6], 0 }
   0x3   :  { %12 = vsyncpa [#allocation4], 0 }
   0x4   :  { %14 = vsyncpa [#allocation4 + $0x1], 0  ;;  %s734_s12 = smov 0   ;;  %s736_s13 = smov 0  }
   0x5   :  { %s738_s14 = smov 0   ;;  %s740_s15 = smov 0  }
   0x6   :  { %s742_s16 = smov 0   ;;  %s744_s17 = smov 0  }
   0x7 LB: > { %s457_s18 = sadd.s32 4294967295, %s705_s17   ;;  %s458_s19 = sadd.s32 4294967294, %s705_s17   ;;  %s705_s17 = sphi %s744_s17, %s20_s17   ;;  %s701_s16 = sphi %s742_s16, %s938_s16   ;;  %s697_s15 = sphi %s740_s15, %s937_s15   ;;  %s693_s14 = sphi %s738_s14, %s936_s14   ;;  %s689_s13 = sphi %s736_s13, %s935_s13   ;;  %s685_s12 = sphi %s734_s12, %s934_s12  }
   0x8   : > { %p61_p0 = scmp.ne.s32.totalorder %s689_s13, %s685_s12  ;;  %p768_p1 = scmp.eq.s32.totalorder %s457_s18, 0 }
   0x9   : > { %p772_p2 = scmp.eq.s32.totalorder %s457_s18, 1  ;;  %p147_p3 = scmp.eq.s32.totalorder %s458_s19, 1 }
   0xa   : > { %p778_p4 = por %p768_p1, %p61_p0  ;;  %p459_p5 = scmp.ge.s32.totalorder %s705_s17, 1 }
   0xb   : > { %p783_p6 = por %p147_p3, %p61_p0  ;;  %p154_p7 = scmp.lt.s32.totalorder %s705_s17, 3 }
   0xc   : > { %s924_s22 = scalar_select %p778_p4, 1, 0 }
   0xd   : > { %s925_s23 = scalar_select %p783_p6, 1, 0 }
   0xe   : > { %p788_p8 = pnand %p459_p5, %p154_p7  ;;  %s707_s25 = smov [#allocation5]  }
   0xf   : > { %s170_s26 = sshll.u32 %s707_s25, 4  ;;  %s39_s28 = sadd.s32 1, %s701_s16  ;;  %s171_s26 = int_to_ptr.vmem [resolvable:$true] %s170_s26 }
  0x10   : > { %p496_p9 = pneg %p788_p8  ;;  %s578_s29 = scalar_lea.vmem %s171_s26, 256 }
  0x11   : > { %p579_p13 = scmp.ne.s32.totalorder %s171_s26, %s578_s29  ;;  %p586_p5 = scmp.lt.s32.totalorder %s171_s26, %s171_s26 }
  0x12   : > { %p797_p11 = pnand %p496_p9, %p768_p1  ;;  %p587_p7 = scmp.lt.s32.totalorder %s578_s29, %s578_s29 }
  0x14   : > { %p569_p12 = pneg %p797_p11  ;;  %p588_p6 = por %p587_p7, %p586_p5 }
  0x16   : > { %p581_p0 = pnand %p579_p13, %p569_p12 }
  0x18   : > { %p582_p3 = pneg %p581_p0 }
  0x1a   : > { %p589_p4 = pnand %p588_p6, %p582_p3 }
  0x1c   : > { %592 = shalt.err (!%p589_p4)
}
  0x1d   : > { %s708_s30 = smov 64   ;;  %s709_s4 = smov 4  }
  0x1e   : > { %499 = dma.hbm_to_vmem [thread:$0]  (!%p797_p11), %s918_s1, 256, %s171_s26, [#allocation6], %s708_s30, %s708_s30, %s709_s4  }
  0x1f   : > { %p41_p6 = scmp.ge.s32.totalorder %s39_s28, 2  ;;  %s48_s7 = sadd.s32 1, %s693_s14 }
  0x20   : > { %p55_p4 = scmp.ne.s32.totalorder %s693_s14, %s689_s13  ;;  %p56_p9 = scmp.eq.s32.totalorder %s705_s17, 0 }
  0x21   : > { %s940_s28 = smov (%p41_p6, %s39_s28), 0  ;;  %p509_p0 = scmp.lt.s32.totalorder %s705_s17, 2 }
  0x22   : > { %p815_p12 = por %p56_p9, %p55_p4  ;;  %p821_p13 = por %p772_p2, %p55_p4 }
  0x23   : > { %s43_s10 = ssub.s32 %s701_s16, %s940_s28  ;;  %s190_s11 = sand.u32 1, %s693_s14  }
  0x24   : > { %p46_p11 = scmp.eq.s32.totalorder %s43_s10, 0  ;;  %s463_s18 = sshll.u32 %s190_s11, 2 }
  0x25   : > { %s464_s25 = sshll.u32 %s701_s16, 6  ;;  %s194_s30 = scalar_lea.vmem [#allocation2], %s463_s18 }
  0x26   : > { %s830_s19 = scalar_select %p46_p11, %s693_s14, %s48_s7  }
  0x27   : > { %s200_s29 = scalar_lea.hbm %s917_s0, %s464_s25  ;;  %s202_s4 = sshll.u32 %s194_s30, 4  ;;  %s203_s4 = int_to_ptr.vmem [resolvable:$true] %s202_s4 }
  0x28   : > { %p838_p2 = pnand %p509_p0, %p815_p12  ;;  %s191_s5 = scalar_lea.sflag [#allocation3], %s190_s11 }
  0x29   : > { %s606_s6 = scalar_lea.vmem %s203_s4, 64  ;;  %s710_s7 = smov [#allocation2]  }
  0x2a   : > { %p595_p3 = pneg %p838_p2  ;;  %p607_p5 = scmp.ne.s32.totalorder %s203_s4, %s606_s6 }
  0x2b   : > { %s611_s10 = sshll.u32 %s710_s7, 4  ;;  %s612_s10 = int_to_ptr.vmem [resolvable:$false] %s611_s10 }
  0x2c   : > { %p609_p7 = pnand %p607_p5, %p595_p3  ;;  %s613_s25 = scalar_lea.vmem %s612_s10, 128 }
  0x2d   : > { %p614_p4 = scmp.lt.s32.totalorder %s203_s4, %s612_s10  ;;  %p615_p9 = scmp.lt.s32.totalorder %s613_s25, %s606_s6 }
  0x2e   : > { %p610_p6 = pneg %p609_p7 }
  0x2f   : > { %p616_p11 = por %p615_p9, %p614_p4 }
  0x31   : > { %p617_p10 = pnand %p616_p11, %p610_p6 }
  0x33   : > { %620 = shalt.err (!%p617_p10)
}
  0x34   : > { %503 = dma.hbm_to_vmem [thread:$0]  (!%p838_p2), %s200_s29, 64, %s203_s4, %s191_s5  }
  0x35   : > { %211 = sbr.rel (%p788_p8) target bundleno = 279 (0x117), region = 32  ;;  %s849_s8 = sand.u32 (!%p788_p8), 1, %s689_s13  }
  0x36   : > { %s466_s11 = sshll.u32 (!%p788_p8), %s849_s8, 2  ;;  %s214_s18 = scalar_lea.sflag (!%p788_p8), [#allocation3], %s849_s8 }
  0x37   : > { %s217_s26 = scalar_lea.vmem (!%p788_p8), [#allocation2], %s466_s11  ;;  %p931_p12 = scmp.ne.s32.totalorder (!%p788_p8), %s924_s22, 0 }
  0x3a   : > { %672 = dma.done.wait (%p931_p12), %s214_s18, 64  }
  0x3b   : > { %674 = vsyncadd (%p931_p12), %s214_s18, 4294967232 }
  0x3c   : > { %676 = dma.done.wait (%p768_p1), [#allocation6], 256  }
  0x3d   : > { %678 = vsyncadd (%p768_p1), [#allocation6], 4294967040  ;;  %v711_v0 = vmov 0.0   ;;  %vm712_vm0 = vmmov 0   ;;  %v565_v1 = vld [vmem:[#allocation5 + $0x8] sm:$0xff]   ;;  %v566_v2 = vld [vmem:[#allocation5] sm:$0xff]  }
  0x3e   : > { %480 = vmatprep.subr.bf16.mxu0 %v711_v0  ;;  %484 = vmatprep.mubr.msk.bf16.mxu0 %vm712_vm0, %v711_v0  ;;  %v252_v3 = vld [vmem:[%s217_s26] sm:$0xf]  ;;  %vm269_vm1 = vcmask 261120   ;;  %s468_s22 = sshll.u32 %s849_s8, 3  ;;  %s474_s27 = sshll.u32 %s697_s15, 7 }
  0x3f   : > { %481 = vmatpush3.bf16.msra.mxu0 %v565_v1  ;;  %v472_v4 = vld [vmem:[%s919_s2] ss:$0 sm:$0xff]  ;;  %s246_s29 = scalar_lea.vmem [#allocation7], %s468_s22  ;;  %s869_s5 = scalar_lea.hbm %s920_s3, %s474_s27 }
  0x40   : > { %482 = vmatprep.subr.bf16.mxu0 %v711_v0  ;;  %s348_s30 = sshll.u32 %s246_s29, 4  ;;  %s334_s6 = scalar_lea.sflag [#allocation4], %s849_s8  ;;  %s871_s30 = int_to_ptr.vmem [resolvable:$true] %s348_s30 }
  0x41   : > { %s621_s7 = scalar_lea.vmem %s871_s30, 128  ;;  %s713_s15 = smov [#allocation7]  }
  0x42   : > { %p622_p1 = scmp.ne.s32.totalorder %s871_s30, %s621_s7  ;;  %s625_s10 = sshll.u32 %s713_s15, 4  ;;  %s626_s10 = int_to_ptr.vmem [resolvable:$false] %s625_s10 }
  0x43   : > { %483 = vmatpush3.bf16.msra.mxu0 %v566_v2  ;;  %s627_s25 = scalar_lea.vmem %s626_s10, 256  ;;  %p628_p0 = scmp.lt.s32.totalorder %s871_s30, %s626_s10 }
  0x44   : > { %p623_p8 = pnand %p622_p1, %p821_p13  ;;  %p629_p2 = scmp.lt.s32.totalorder %s627_s25, %s621_s7 }
  0x46   : > { %485 = vmatmul.mubr.msk.bf16.vlgmr.msra.gmra.mxu0 %vm269_vm1, %v252_v3  ;;  %p624_p10 = pneg %p623_p8  ;;  %p630_p3 = por %p629_p2, %p628_p0 }
  0x48   : > { %p631_p5 = pnand %p630_p3, %p624_p10 }
 0x106   : > { %v307_v5 = vpop.f32.mrf.mxu0 }
 0x107   : > { %v324_v6 = vadd.f32 %v472_v4, %v307_v5 }
 0x108   : > { %v486_v7 = vpop.f32.mrf.mxu0 }
 0x109   : > { %325 = vst.msk [vmem:[%s246_s29] sm:$0xff] %vm269_vm1, %v324_v6 }
 0x10a   : > { %v310_v8 = vpop.f32.mrf.mxu0 }
 0x10b   : > { %634 = shalt.err (!%p631_p5)
}
 0x10c   : > { %s635_s11 = scalar_lea.hbm %s869_s5, 128  ;;  %s639_s26 = scalar_lea.hbm %s920_s3, 256 }
 0x10d   : > { %p636_p7 = scmp.ne.s32.totalorder %s869_s5, %s635_s11  ;;  %p640_p9 = scmp.lt.s32.totalorder %s869_s5, %s920_s3 }
 0x10e   : > { %p641_p11 = scmp.lt.s32.totalorder %s639_s26, %s635_s11 }
 0x10f   : > { %p637_p6 = pnand %p636_p7, %p821_p13 }
 0x110   : > { %p642_p12 = por %p641_p11, %p640_p9 }
 0x111   : > { %p638_p4 = pneg %p637_p6 }
 0x113   : > { %p643_p1 = pnand %p642_p12, %p638_p4 }
 0x115   : > { %646 = shalt.err (!%p643_p1)
}
 0x116   : > { %494 = dma.vmem_to_hbm [thread:$0]  (%p821_p13), %s871_s30, 128, %s869_s5, %s334_s6   ;;  %v487_v9 = vpop.f32.mrf.mxu0 }
 0x117 PF: > { %s360_s20 = sand.u32 1, %s685_s12   ;;  %p932_p8 = scmp.ne.s32.totalorder %s925_s23, 0 }
 0x118   : > { %p933_p10 = scmp.ge.s32.totalorder %s705_s17, 2  ;;  %s361_s27 = scalar_lea.sflag [#allocation4], %s360_s20 }
 0x11a   : > { %p505_p0 = pnand %p933_p10, %p932_p8 }
 0x11c   : > { %p506_p2 = pneg %p505_p0 }
 0x11e   : > { %680 = dma.done.wait (%p506_p2), %s361_s27, 128  }
 0x11f   : > { %682 = vsyncadd (%p506_p2), %s361_s27, 4294967168  ;;  %s20_s17 = sadd.s32 1, %s705_s17   ;;  %s934_s12 = smov %s689_s13 }
 0x120   : > { %p17_p3 = scmp.ge.s32.totalorder %s20_s17, 4   ;;  %s935_s13 = smov %s693_s14 }
 0x121   : > { %s936_s14 = smov %s830_s19  ;;  %s937_s15 = smov %s701_s16 }
 0x122   : > { %s938_s16 = smov %s940_s28  ;;  %19 = sbr.rel (!%p17_p3) target bundleno = 7 (0x7), region = 93 }
 0x127   :  { %366 = vsyncpa [#allocation3], 1 }
 0x128   :  { %368 = vsyncpa [#allocation3 + $0x1], 1 }
 0x129   :  { %369 = vsyncpa [#allocation6], 1 }
 0x12a   :  { %370 = vsyncpa [#allocation4], 1 }
 0x12b   :  { %372 = vsyncpa [#allocation4 + $0x1], 1 }

</bundles_post_ra>
